<compile_context>
chip_gen: v6e
topology: v6e:2x2x1
jax: 0.10.0
libtpu: 0.0.40
codegen_flags: <defaults>
</compile_context>

<pallas_src>
import functools

import jax
import jax.numpy as jnp
import numpy as np
from jax.experimental import pallas as pl
from jax.experimental.pallas import tpu as pltpu

EPS = 1e-5
LANE = 128
DEFAULT_TILE_R = 256            # rows per grid step (multiple of 8; ~1.5 MiB working set,
                                # fits comfortably in 64 MiB v7x VMEM as well as v5e/v6e)
VMEM_LIMIT = 32 * 1024 * 1024   # explicit, conservative scoped-VMEM cap for all chips


def _round_up(x, m):
    return (x + m - 1) // m * m


def _pad2(a, rows, cols):
    return jnp.pad(a, ((0, rows - a.shape[0]), (0, cols - a.shape[1])))


def _pad1(a, n):
    return jnp.pad(a, (0, n - a.shape[0]))


def _compiler_params():
    return pltpu.CompilerParams(dimension_semantics=("parallel",),
                                vmem_limit_bytes=VMEM_LIMIT)


# ------------------------------ Pallas kernels ------------------------------ #
def _mm_stats_kernel(p_ref, w_ref, y_ref, st_ref):
    """Pass A (single conv): y = patches @ W (bf16 in, f32 acc) + per-tile stats."""
    y = jnp.dot(p_ref[...], w_ref[...], preferred_element_type=jnp.float32)
    y_ref[...] = y
    st_ref[0, 0:1, :] = jnp.sum(y, axis=0, keepdims=True)
    st_ref[0, 1:2, :] = jnp.sum(y * y, axis=0, keepdims=True)


def _dual_mm_stats_kernel(pa_ref, wa_ref, pb_ref, wb_ref, ya_ref, yb_ref, st_ref):
    """Pass A (fused conv2 + shortcut conv): two matmuls + both stat partials."""
    ya = jnp.dot(pa_ref[...], wa_ref[...], preferred_element_type=jnp.float32)
    yb = jnp.dot(pb_ref[...], wb_ref[...], preferred_element_type=jnp.float32)
    ya_ref[...] = ya
    yb_ref[...] = yb
    st_ref[0, 0:1, :] = jnp.sum(ya, axis=0, keepdims=True)
    st_ref[0, 1:2, :] = jnp.sum(ya * ya, axis=0, keepdims=True)
    st_ref[0, 2:3, :] = jnp.sum(yb, axis=0, keepdims=True)
    st_ref[0, 3:4, :] = jnp.sum(yb * yb, axis=0, keepdims=True)


def _affine_kernel(y_ref, sc_ref, sh_ref, o_ref, *, relu):
    """Pass B: BN folded into one FMA: out = y * scale + shift (+ ReLU)."""
    y = y_ref[...] * sc_ref[...] + sh_ref[...]
    if relu:
        y = jnp.maximum(y, 0.0)
    o_ref[...] = y


def _dual_affine_add_kernel(ya_ref, yb_ref, sca_ref, sha_ref, scb_ref, shb_ref, o_ref):
    """Pass B (fused): out = BN2(conv2) + BN_e(extra), two FMAs + add, one store."""
    o_ref[...] = (ya_ref[...] * sca_ref[...] + sha_ref[...]
                  + yb_ref[...] * scb_ref[...] + shb_ref[...])


def _affine_res_kernel(y_ref, r_ref, sc_ref, sh_ref, o_ref):
    """Pass B (identity shortcut): out = BN2(conv2) + x."""
    o_ref[...] = y_ref[...] * sc_ref[...] + sh_ref[...] + r_ref[...]


# --------------------------- pallas_call wrappers --------------------------- #
def _mm_stats(patches, w, tile_r):
    rp, k = patches.shape
    c = w.shape[1]
    nt = rp // tile_r
    y, st = pl.pallas_call(
        _mm_stats_kernel,
        grid=(nt,),
        in_specs=[pl.BlockSpec((tile_r, k), lambda r: (r, 0)),
                  pl.BlockSpec((k, c), lambda r: (0, 0))],
        out_specs=[pl.BlockSpec((tile_r, c), lambda r: (r, 0)),
                   pl.BlockSpec((1, 2, c), lambda r: (r, 0, 0))],
        out_shape=[jax.ShapeDtypeStruct((rp, c), jnp.float32),
                   jax.ShapeDtypeStruct((nt, 2, c), jnp.float32)],
        compiler_params=_compiler_params(),
    )(patches, w)
    return y, st.sum(axis=0)                       # (2, C): [sum, sum_of_squares]


def _dual_mm_stats(pa, wa, pb, wb, tile_r):
    rp, ka = pa.shape
    kb = pb.shape[1]
    c = wa.shape[1]
    nt = rp // tile_r
    ya, yb, st = pl.pallas_call(
        _dual_mm_stats_kernel,
        grid=(nt,),
        in_specs=[pl.BlockSpec((tile_r, ka), lambda r: (r, 0)),
                  pl.BlockSpec((ka, c), lambda r: (0, 0)),
                  pl.BlockSpec((tile_r, kb), lambda r: (r, 0)),
                  pl.BlockSpec((kb, c), lambda r: (0, 0))],
        out_specs=[pl.BlockSpec((tile_r, c), lambda r: (r, 0)),
                   pl.BlockSpec((tile_r, c), lambda r: (r, 0)),
                   pl.BlockSpec((1, 4, c), lambda r: (r, 0, 0))],
        out_shape=[jax.ShapeDtypeStruct((rp, c), jnp.float32),
                   jax.ShapeDtypeStruct((rp, c), jnp.float32),
                   jax.ShapeDtypeStruct((nt, 4, c), jnp.float32)],
        compiler_params=_compiler_params(),
    )(pa, wa, pb, wb)
    return ya, yb, st.sum(axis=0)                  # (4, C)


def _affine(y, scale, shift, tile_r, relu):
    rp, c = y.shape
    nt = rp // tile_r
    return pl.pallas_call(
        functools.partial(_affine_kernel, relu=relu),
        grid=(nt,),
        in_specs=[pl.BlockSpec((tile_r, c), lambda r: (r, 0)),
                  pl.BlockSpec((1, c), lambda r: (0, 0)),
                  pl.BlockSpec((1, c), lambda r: (0, 0))],
        out_specs=pl.BlockSpec((tile_r, c), lambda r: (r, 0)),
        out_shape=jax.ShapeDtypeStruct((rp, c), jnp.float32),
        compiler_params=_compiler_params(),
    )(y, scale, shift)


def _dual_affine_add(ya, yb, sca, sha, scb, shb, tile_r):
    rp, c = ya.shape
    nt = rp // tile_r
    return pl.pallas_call(
        _dual_affine_add_kernel,
        grid=(nt,),
        in_specs=[pl.BlockSpec((tile_r, c), lambda r: (r, 0)),
                  pl.BlockSpec((tile_r, c), lambda r: (r, 0)),
                  pl.BlockSpec((1, c), lambda r: (0, 0)),
                  pl.BlockSpec((1, c), lambda r: (0, 0)),
                  pl.BlockSpec((1, c), lambda r: (0, 0)),
                  pl.BlockSpec((1, c), lambda r: (0, 0))],
        out_specs=pl.BlockSpec((tile_r, c), lambda r: (r, 0)),
        out_shape=jax.ShapeDtypeStruct((rp, c), jnp.float32),
        compiler_params=_compiler_params(),
    )(ya, yb, sca, sha, scb, shb)


def _affine_res(y, res, scale, shift, tile_r):
    rp, c = y.shape
    nt = rp // tile_r
    return pl.pallas_call(
        _affine_res_kernel,
        grid=(nt,),
        in_specs=[pl.BlockSpec((tile_r, c), lambda r: (r, 0)),
                  pl.BlockSpec((tile_r, c), lambda r: (r, 0)),
                  pl.BlockSpec((1, c), lambda r: (0, 0)),
                  pl.BlockSpec((1, c), lambda r: (0, 0))],
        out_specs=pl.BlockSpec((tile_r, c), lambda r: (r, 0)),
        out_shape=jax.ShapeDtypeStruct((rp, c), jnp.float32),
        compiler_params=_compiler_params(),
    )(y, res, scale, shift)


# ------------------------------ plain-JAX glue ------------------------------ #
def _im2col_cl(x_cl, k, stride, pad):
    """x_cl: [B, L, C] -> patches [B*Lout, k*C] (column order = tap*C + c), Lout."""
    B, L, C = x_cl.shape
    xp = jnp.pad(x_cl, ((0, 0), (pad, pad), (0, 0)))
    lout = (L + 2 * pad - k) // stride + 1
    idx = jnp.arange(lout)[:, None] * stride + jnp.arange(k)[None, :]   # [Lout, k]
    patches = xp[:, idx, :]                                             # [B, Lout, k, C]
    return patches.reshape(B * lout, k * C), lout


def _bn_scale_shift(sums, n_rows, gamma, beta):
    """Fold training-mode BN (biased variance, eps=1e-5) into per-channel FMA."""
    mean = sums[0] / n_rows
    var = jnp.maximum(sums[1] / n_rows - mean * mean, 0.0)   # guard f32 cancellation
    scale = gamma * jax.lax.rsqrt(var + EPS)
    shift = beta - mean * scale
    return scale.reshape(1, -1), shift.reshape(1, -1)


def resblk_forward(x, params, stride, tile_r=DEFAULT_TILE_R):
    """ResBlk.forward.  x: [B, Cin, L] -> [B, Cout, L_out]."""
    B, Cin, L = x.shape
    Cout = params["conv1_w"].shape[0]
    C = _round_up(Cout, LANE)                    # lane-padded channel width

    x_cl = jnp.transpose(x, (0, 2, 1))           # channels-last [B, L, Cin]

    # ----------------- conv1 (k=3, stride, pad=1) + bn1 + relu ----------------
    p1, L1 = _im2col_cl(x_cl, 3, stride, 1)      # [B*L1, 3*Cin]
    R = B * L1
    tr = min(tile_r, _round_up(R, 8))
    Rp = _round_up(R, tr)
    K1 = _round_up(p1.shape[1], LANE)
    p1 = _pad2(p1, Rp, K1).astype(jnp.bfloat16)
    w1 = jnp.transpose(params["conv1_w"], (2, 1, 0)).reshape(3 * Cin, Cout)
    w1 = _pad2(w1, K1, C).astype(jnp.bfloat16)
    # NOTE: conv biases are intentionally dropped in all kernel paths --
    # training-mode BN subtracts the batch mean, which cancels them exactly.
    y1, st1 = _mm_stats(p1, w1, tr)
    sc1, sh1 = _bn_scale_shift(st1, R,
                               _pad1(params["bn1_g"], C),
                               _pad1(params["bn1_b"], C))
    out1 = _affine(y1, sc1, sh1, tr, relu=True)              # [Rp, C] channels-last

    # --------- conv2 (k=3, s=1, p=1) + bn2, fused with shortcut branch --------
    # out1 stays channels-last + lane-padded: no NCL transpose round trip.
    out1_cl = out1[:R].reshape(B, L1, C)
    # TODO(synk): replace this im2col (3x activation duplication in HBM) with
    # in-kernel shifted matmuls over haloed row tiles.
    p2, L2 = _im2col_cl(out1_cl, 3, 1, 1)                    # [B*L2, 3*C]; L2 == L1
    assert L2 == L1
    p2 = _pad2(p2, Rp, 3 * C).astype(jnp.bfloat16)
    w2 = jnp.transpose(params["conv2_w"], (2, 1, 0))         # [3, Cout, Cout]
    w2p = jnp.zeros((3, C, C), jnp.float32).at[:, :Cout, :Cout].set(w2)
    w2p = w2p.reshape(3 * C, C).astype(jnp.bfloat16)

    if "extra_w" in params:
        # shortcut: Conv1d(k=2, stride, pad=0) + BN, fused with the conv2 passes
        pe, Le = _im2col_cl(x_cl, 2, stride, 0)
        assert Le == L1, "shortcut length must match main-path length"
        Ke = _round_up(pe.shape[1], LANE)
        pe = _pad2(pe, Rp, Ke).astype(jnp.bfloat16)
        we = jnp.transpose(params["extra_w"], (2, 1, 0)).reshape(2 * Cin, Cout)
        we = _pad2(we, Ke, C).astype(jnp.bfloat16)

        y2, ye, st = _dual_mm_stats(p2, w2p, pe, we, tr)
        sc2, sh2 = _bn_scale_shift(st[:2], R,
                                   _pad1(params["bn2_g"], C),
                                   _pad1(params["bn2_b"], C))
        sce, she = _bn_scale_shift(st[2:], R,
                                   _pad1(params["extra_g"], C),
                                   _pad1(params["extra_beta"], C))
        out = _dual_affine_add(y2, ye, sc2, sh2, sce, she, tr)
    else:
        # identity shortcut: requires ch_in == ch_out and stride == 1
        assert Cin == Cout and stride == 1, "identity shortcut needs ch_in==ch_out, stride==1"
        y2, st2 = _mm_stats(p2, w2p, tr)
        sc2, sh2 = _bn_scale_shift(st2, R,
                                   _pad1(params["bn2_g"], C),
                                   _pad1(params["bn2_b"], C))
        res = _pad2(x_cl.reshape(B * L, Cin), Rp, C)
        out = _affine_res(y2, res, sc2, sh2, tr)

    out = out[:R, :Cout].reshape(B, L2, Cout)
    return jnp.transpose(out, (0, 2, 1))                     # [B, Cout, L_out]


# ------------------------- pure-JAX reference check ------------------------- #
def _conv1d_ref(x, w, b, stride, pad):
    out = jax.lax.conv_general_dilated(
        x, w, window_strides=(stride,), padding=[(pad, pad)],
        dimension_numbers=("NCH", "OIH", "NCH"))
    return out + b[None, :, None]


def _bn_ref(x, g, b):
    mean = x.mean(axis=(0, 2), keepdims=True)
    var = ((x - mean) ** 2).mean(axis=(0, 2), keepdims=True)
    return (x - mean) * jax.lax.rsqrt(var + EPS) * g[None, :, None] + b[None, :, None]


def resblk_ref(x, params, stride):
    out = _conv1d_ref(x, params["conv1_w"], params["conv1_b"], stride, 1)
    out = jnp.maximum(_bn_ref(out, params["bn1_g"], params["bn1_b"]), 0.0)
    out = _conv1d_ref(out, params["conv2_w"], params["conv2_b"], 1, 1)
    out = _bn_ref(out, params["bn2_g"], params["bn2_b"])
    if "extra_w" in params:
        sc = _conv1d_ref(x, params["extra_w"], params["extra_b"], stride, 0)
        sc = _bn_ref(sc, params["extra_g"], params["extra_beta"])
    else:
        sc = x
    return sc + out


# ----------------------------------- main ----------------------------------- #
if __name__ == "__main__":
    # ch_in != ch_out -> shortcut conv path; stride=2, even L so lengths match
    B, Cin, Cout, L, stride = 2, 4, 8, 16, 2

    keys = jax.random.split(jax.random.PRNGKey(0), 13)
    params = {
        "conv1_w": 0.1 * jax.random.normal(keys[0], (Cout, Cin, 3), jnp.float32),
        "conv1_b": 0.1 * jax.random.normal(keys[1], (Cout,), jnp.float32),
        "bn1_g": 1.0 + 0.1 * jax.random.normal(keys[2], (Cout,), jnp.float32),
        "bn1_b": 0.1 * jax.random.normal(keys[3], (Cout,), jnp.float32),
        "conv2_w": 0.1 * jax.random.normal(keys[4], (Cout, Cout, 3), jnp.float32),
        "conv2_b": 0.1 * jax.random.normal(keys[5], (Cout,), jnp.float32),
        "bn2_g": 1.0 + 0.1 * jax.random.normal(keys[6], (Cout,), jnp.float32),
        "bn2_b": 0.1 * jax.random.normal(keys[7], (Cout,), jnp.float32),
        "extra_w": 0.1 * jax.random.normal(keys[8], (Cout, Cin, 2), jnp.float32),
        "extra_b": 0.1 * jax.random.normal(keys[9], (Cout,), jnp.float32),
        "extra_g": 1.0 + 0.1 * jax.random.normal(keys[10], (Cout,), jnp.float32),
        "extra_beta": 0.1 * jax.random.normal(keys[11], (Cout,), jnp.float32),
    }
    x = jax.random.normal(keys[12], (B, Cin, L), jnp.float32)

    # The kernels feed the MXU in bf16 (with f32 accumulation); pre-round the
    # matmul operands so the f32 reference sees identical quantized values and
    # the comparison isolates kernel correctness rather than input rounding.
    def _q(a):
        return a.astype(jnp.bfloat16).astype(jnp.float32)
    x = _q(x)
    for name in ("conv1_w", "conv2_w", "extra_w"):
        params[name] = _q(params[name])

    out = jax.block_until_ready(resblk_forward(x, params, stride))
    ref = jax.block_until_ready(resblk_ref(x, params, stride))

    assert out.shape == (B, Cout, L // stride), out.shape
    np.testing.assert_allclose(np.asarray(out), np.asarray(ref),
                               rtol=2e-2, atol=2e-2)
    print("KERNEL_OK")
</pallas_src>

<mosaic_0001>
module attributes {stable_mosaic.version = 11 : i64} {
  func.func @_mm_stats_kernel(%arg0: i32, %arg1: memref<16x128xbf16, #tpu.memory_space<vmem>>, %arg2: memref<128x128xbf16, #tpu.memory_space<vmem>>, %arg3: memref<16x128xf32, #tpu.memory_space<vmem>>, %arg4: memref<1x2x128xf32, #tpu.memory_space<vmem>>) attributes {dimension_semantics = [#tpu.dimension_semantics<parallel>], iteration_bounds = array<i64: 1>, scalar_prefetch = 0 : i64, scratch_operands = 0 : i64, tpu.core_type = #tpu.core_type<tc>, window_params = [{transform_indices = @transform_0, window_bounds = array<i64: 16, 128>}, {pipeline_mode = #tpu.pipeline_mode<synchronous>, transform_indices = @transform_1, window_bounds = array<i64: 128, 128>}, {transform_indices = @transform_2, window_bounds = array<i64: 16, 128>}, {transform_indices = @transform_3, window_bounds = array<i64: 1, 2, 128>}]} {
    %c0 = arith.constant 0 : index
    %c0_0 = arith.constant 0 : index
    %0 = vector.load %arg1[%c0, %c0_0] : memref<16x128xbf16, #tpu.memory_space<vmem>>, vector<16x128xbf16>
    %c0_1 = arith.constant 0 : index
    %c0_2 = arith.constant 0 : index
    %1 = vector.load %arg2[%c0_1, %c0_2] : memref<128x128xbf16, #tpu.memory_space<vmem>>, vector<128x128xbf16>
    %cst = arith.constant dense<0.000000e+00> : vector<16x128xf32>
    %2 = tpu.matmul %0, %1, %cst {dimension_numbers = #tpu.dot_dimension_numbers<[1], [0], [0], [1], [0, 0, 1, 1], [], []>} : vector<16x128xbf16>, vector<128x128xbf16>, vector<16x128xf32> -> vector<16x128xf32>
    %c0_3 = arith.constant 0 : index
    %c0_4 = arith.constant 0 : index
    %3 = vector.load %arg3[%c0_3, %c0_4] : memref<16x128xf32, #tpu.memory_space<vmem>>, vector<16x128xf32>
    tpu.vector_store %arg3[%c0_3, %c0_4], %2 {strides = array<i32>} : memref<16x128xf32, #tpu.memory_space<vmem>>, vector<16x128xf32>,
    %cst_5 = arith.constant dense<0.000000e+00> : vector<128xf32>
    %4 = vector.multi_reduction <add>, %2, %cst_5 [0] : vector<16x128xf32> to vector<128xf32>
    %5 = vector.shape_cast %4 : vector<128xf32> to vector<1x128xf32>
    %c0_6 = arith.constant 0 : index
    %c0_7 = arith.constant 0 : index
    %c0_8 = arith.constant 0 : index
    %6 = vector.load %arg4[%c0_6, %c0_7, %c0_8] : memref<1x2x128xf32, #tpu.memory_space<vmem>>, vector<1x1x128xf32>
    %7 = vector.shape_cast %6 : vector<1x1x128xf32> to vector<1x128xf32>
    %8 = vector.shape_cast %5 : vector<1x128xf32> to vector<1x1x128xf32>
    tpu.vector_store %arg4[%c0_6, %c0_7, %c0_8], %8 {strides = array<i32>} : memref<1x2x128xf32, #tpu.memory_space<vmem>>, vector<1x1x128xf32>,
    %9 = arith.mulf %2, %2 : vector<16x128xf32>
    %cst_9 = arith.constant dense<0.000000e+00> : vector<128xf32>
    %10 = vector.multi_reduction <add>, %9, %cst_9 [0] : vector<16x128xf32> to vector<128xf32>
    %11 = vector.shape_cast %10 : vector<128xf32> to vector<1x128xf32>
    %c0_10 = arith.constant 0 : index
    %c1 = arith.constant 1 : index
    %c0_11 = arith.constant 0 : index
    %12 = vector.load %arg4[%c0_10, %c1, %c0_11] : memref<1x2x128xf32, #tpu.memory_space<vmem>>, vector<1x1x128xf32>
    %13 = vector.shape_cast %12 : vector<1x1x128xf32> to vector<1x128xf32>
    %14 = vector.shape_cast %11 : vector<1x128xf32> to vector<1x1x128xf32>
    tpu.vector_store %arg4[%c0_10, %c1, %c0_11], %14 {strides = array<i32>} : memref<1x2x128xf32, #tpu.memory_space<vmem>>, vector<1x1x128xf32>,
    return
  }
  func.func @transform_0(%arg0: i32) -> (i32, i32) {
    %c0_i32 = arith.constant 0 : i32
    %c0_i32_0 = arith.constant 0 : i32
    return %arg0, %c0_i32 : i32, i32
  }
  func.func @transform_1(%arg0: i32) -> (i32, i32) {
    %c0_i32 = arith.constant 0 : i32
    %c0_i32_0 = arith.constant 0 : i32
    %c0_i32_1 = arith.constant 0 : i32
    return %c0_i32, %c0_i32_0 : i32, i32
  }
  func.func @transform_2(%arg0: i32) -> (i32, i32) {
    %c0_i32 = arith.constant 0 : i32
    %c0_i32_0 = arith.constant 0 : i32
    return %arg0, %c0_i32 : i32, i32
  }
  func.func @transform_3(%arg0: i32) -> (i32, i32, i32) {
    %c0_i32 = arith.constant 0 : i32
    %c0_i32_0 = arith.constant 0 : i32
    %c0_i32_1 = arith.constant 0 : i32
    return %arg0, %c0_i32, %c0_i32_0 : i32, i32, i32
  }
}

</mosaic_0001>

<bundles_post_ra>
// kernel: tpu_custom_call.1
= control target key start
LH: loop header
LB: loop body
LE: loop exit
PB: predicated region body
PF: predicated region fallthrough
CT: control target
= control target key end

     0   :  { %9 = vsyncpa [#allocation3], 0  ;;  %s396_s0 = inlined_call_operand.hbm [shape: bf16[16,128], index: 0, kind: input, shape index: {}]   ;;  %s397_s1 = inlined_call_operand.hbm [shape: bf16[128,128], index: 1, kind: input, shape index: {}]   ;;  %s398_s2 = inlined_call_operand.hbm [shape: f32[16,128], index: 2, kind: output, shape index: {0}]   ;;  %s399_s3 = inlined_call_operand.hbm [shape: f32[1,2,128], index: 3, kind: output, shape index: {1}]  }
   0x1   :  { %10 = vsyncpa [#allocation6], 0 }
   0x2   :  { %11 = vsyncpa [#allocation4], 0 }
   0x3   :  { %12 = vsyncpa [#allocation9], 0  ;;  %s354_s12 = smov [#allocation2]  }
   0x4   :  { %s18_s13 = sshll.u32 %s354_s12, 4  ;;  %s19_s13 = int_to_ptr.vmem [resolvable:$true] %s18_s13 }
   0x5   :  { %s274_s14 = scalar_lea.vmem %s19_s13, 128  ;;  %p279_p1 = scmp.lt.s32.totalorder %s19_s13, %s19_s13 }
   0x6   :  { %p275_p0 = scmp.ne.s32.totalorder %s19_s13, %s274_s14  ;;  %p280_p2 = scmp.lt.s32.totalorder %s274_s14, %s274_s14 }
   0x8   :  { %p281_p3 = por %p280_p2, %p279_p1 }
   0xa   :  { %p282_p4 = pnand %p281_p3, %p275_p0 }
   0xc   :  { %285 = shalt.err (!%p282_p4)
}
   0xd   :  { %s355_s15 = smov 64   ;;  %s356_s16 = smov 4  }
   0xe   :  { %24 = dma.hbm_to_vmem [thread:$0]  %s396_s0, 128, %s19_s13, [#allocation3], %s355_s15, %s355_s15, %s356_s16  }
   0xf   :  { %s357_s19 = smov [#allocation5]  }
  0x10   :  { %s30_s20 = sshll.u32 %s357_s19, 4  ;;  %s31_s20 = int_to_ptr.vmem [resolvable:$true] %s30_s20 }
  0x11   :  { %s294_s21 = scalar_lea.vmem %s31_s20, 1024  ;;  %p299_p6 = scmp.lt.s32.totalorder %s31_s20, %s31_s20 }
  0x12   :  { %p295_p5 = scmp.ne.s32.totalorder %s31_s20, %s294_s21  ;;  %p300_p7 = scmp.lt.s32.totalorder %s294_s21, %s294_s21 }
  0x14   :  { %p301_p8 = por %p300_p7, %p299_p6 }
  0x16   :  { %p302_p9 = pnand %p301_p8, %p295_p5 }
  0x18   :  { %305 = shalt.err (!%p302_p9)
}
  0x19   :  { %36 = dma.hbm_to_vmem [thread:$0]  %s397_s1, 1024, %s31_s20, [#allocation6], %s355_s15, %s355_s15, %s356_s16  }
  0x1a   :  { %346 = dma.done.wait [#allocation3], 128  }
  0x1b   :  { %347 = vsyncadd [#allocation3], 4294967168 }
  0x1c   :  { %348 = dma.done.wait [#allocation6], 1024  }
  0x1d   :  { %349 = vsyncadd [#allocation6], 4294966272  ;;  %v358_v0 = vmov 0.0   ;;  %vm359_vm0 = vmmov 0   ;;  %v257_v1 = vld [vmem:[#allocation5 + $0x38] sm:$0xff]   ;;  %v258_v2 = vld [vmem:[#allocation5 + $0x30] sm:$0xff]  }
  0x1e   :  { %227 = vmatprep.subr.bf16.mxu0 %v358_v0  ;;  %243 = vmatprep.mubr.msk.bf16.mxu0 %vm359_vm0, %v358_v0  ;;  %v259_v3 = vld [vmem:[#allocation5 + $0x28] sm:$0xff]   ;;  %v260_v4 = vld [vmem:[#allocation5 + $0x20] sm:$0xff]   ;;  %v261_v5 = vld [vmem:[#allocation5 + $0x18] sm:$0xff]   ;;  %s360_s0 = smov [#allocation7]  }
  0x1f   :  { %228 = vmatpush3.bf16.msra.mxu0 %v257_v1  ;;  %v262_v6 = vld [vmem:[#allocation5 + $0x10] sm:$0xff]   ;;  %v263_v7 = vld [vmem:[#allocation5 + $0x8] sm:$0xff]   ;;  %v264_v8 = vld [vmem:[#allocation5] sm:$0xff]   ;;  %s182_s1 = sshll.u32 %s360_s0, 4  ;;  %s183_s1 = int_to_ptr.vmem [resolvable:$true] %s182_s1 }
  0x20   :  { %229 = vmatprep.subr.bf16.mxu0 %v358_v0  ;;  %v265_v9 = vld [vmem:[#allocation2] sm:$0xff]   ;;  %s306_s24 = scalar_lea.vmem %s183_s1, 256  ;;  %p311_p11 = scmp.lt.s32.totalorder %s183_s1, %s183_s1 }
  0x21   :  { %p307_p10 = scmp.ne.s32.totalorder %s183_s1, %s306_s24  ;;  %p312_p12 = scmp.lt.s32.totalorder %s306_s24, %s306_s24 }
  0x23   :  { %230 = vmatpush3.bf16.msra.mxu0 %v258_v2  ;;  %p313_p13 = por %p312_p12, %p311_p11 }
  0x24   :  { %231 = vmatprep.subr.bf16.mxu0 %v358_v0 }
  0x25   :  { %p314_p0 = pnand %p313_p13, %p307_p10 }
  0x27   :  { %232 = vmatpush3.bf16.msra.mxu0 %v259_v3 }
  0x28   :  { %233 = vmatprep.subr.bf16.mxu0 %v358_v0 }
  0x2b   :  { %234 = vmatpush3.bf16.msra.mxu0 %v260_v4 }
  0x2c   :  { %235 = vmatprep.subr.bf16.mxu0 %v358_v0 }
  0x2f   :  { %236 = vmatpush3.bf16.msra.mxu0 %v261_v5 }
  0x30   :  { %237 = vmatprep.subr.bf16.mxu0 %v358_v0 }
  0x33   :  { %238 = vmatpush3.bf16.msra.mxu0 %v262_v6 }
  0x34   :  { %239 = vmatprep.subr.bf16.mxu0 %v358_v0 }
  0x37   :  { %240 = vmatpush3.bf16.msra.mxu0 %v263_v7 }
  0x38   :  { %241 = vmatprep.subr.bf16.mxu0 %v358_v0 }
  0x3b   :  { %242 = vmatpush3.bf16.msra.mxu0 %v264_v8 }
  0x3e   :  { %244 = vmatmul.mubr.bf16.vlgmr.msra.gmra.mxu0 %v265_v9 }
  0xfe   :  { %v150_v10 = vpop.f32.mrf.mxu0 }
  0xff   :  { %157 = vst [vmem:[#allocation7] sm:$0xff] %v150_v10  ;;  %v167_v13 = vmul.f32 %v150_v10, %v150_v10 }
 0x100   :  { %v245_v11 = vpop.f32.mrf.mxu0 }
 0x102   :  { %v153_v12 = vpop.f32.mrf.mxu0 }
 0x103   :  { %158 = vst [vmem:[#allocation7 + $0x8] sm:$0xff] %v153_v12  ;;  %v159_v14 = vadd.f32 %v153_v12, %v150_v10  ;;  %v168_v15 = vmul.f32 %v153_v12, %v153_v12 }
 0x104   :  { %v246_v16 = vpop.f32.mrf.mxu0 }
 0x105   :  { %317 = shalt.err (!%p314_p0)
}
 0x106   :  { %s361_s25 = smov 128   ;;  %s362_s26 = smov 8   ;;  %v160_v17 = vrot.slane %v159_v14, 4  ;;  %v169_v18 = vadd.f32 %v168_v15, %v167_v13 }
 0x107   :  { %188 = dma.vmem_to_hbm [thread:$0]  %s183_s1, 256, %s398_s2, [#allocation4], %s361_s25, %s361_s25, %s362_s26  }
 0x108   :  { %v161_v19 = vadd.f32 %v160_v17, %v159_v14  ;;  %v170_v20 = vrot.slane %v169_v18, 4  ;;  %s363_s29 = smov [#allocation8]  }
 0x109   :  { %s195_s30 = sshll.u32 %s363_s29, 4  ;;  %s196_s30 = int_to_ptr.vmem [resolvable:$true] %s195_s30 }
 0x10a   :  { %v162_v21 = vrot.slane %v161_v19, 2  ;;  %v171_v22 = vadd.f32 %v170_v20, %v169_v18  ;;  %s326_s4 = scalar_lea.vmem %s196_s30, 32  ;;  %p331_p2 = scmp.lt.s32.totalorder %s196_s30, %s196_s30 }
 0x10b   :  { %p327_p1 = scmp.ne.s32.totalorder %s196_s30, %s326_s4  ;;  %p332_p3 = scmp.lt.s32.totalorder %s326_s4, %s326_s4 }
 0x10c   :  { %v163_v23 = vadd.f32 %v162_v21, %v161_v19  ;;  %v172_v24 = vrot.slane %v171_v22, 2 }
 0x10d   :  { %p333_p4 = por %p332_p3, %p331_p2 }
 0x10e   :  { %v164_v25 = vrot.slane %v163_v23, 1  ;;  %v173_v26 = vadd.f32 %v172_v24, %v171_v22 }
 0x10f   :  { %p334_p5 = pnand %p333_p4, %p327_p1 }
 0x110   :  { %v165_v27 = vadd.f32 %v164_v25, %v163_v23  ;;  %v174_v28 = vrot.slane %v173_v26, 1 }
 0x112   :  { %166 = vst [vmem:[#allocation8] sm:$0x1] %v165_v27  ;;  %v175_v29 = vadd.f32 %v174_v28, %v173_v26 }
 0x114   :  { %176 = vst [vmem:[#allocation8 + $0x1] sm:$0x1] %v175_v29 }
 0x115   :  { %337 = shalt.err (!%p334_p5)
}
 0x116   :  { %198 = dma.vmem_to_hbm [thread:$0]  %s196_s30, 32, %s399_s3, [#allocation9]  }
 0x117   :  { %350 = dma.done.wait [#allocation4], 256  }
 0x118   :  { %351 = vsyncadd [#allocation4], 4294967040 }
 0x119   :  { %352 = dma.done.wait [#allocation9], 32  }
 0x11a   :  { %353 = vsyncadd [#allocation9], 4294967264 }
 0x11b   :  { %205 = vsyncpa [#allocation3], 1 }
 0x11c   :  { %206 = vsyncpa [#allocation6], 1 }
 0x11d   :  { %207 = vsyncpa [#allocation4], 1 }
 0x11e   :  { %208 = vsyncpa [#allocation9], 1 }

</bundles_post_ra>
